<compile_context>
chip_gen: v5e
topology: v5e:2x2
jax: 0.10.0
libtpu: 0.0.40
codegen_flags: <defaults>
</compile_context>

<pallas_src>
import jax
import jax.numpy as jnp
import numpy as np
from jax.experimental import pallas as pl
from jax.experimental.pallas import tpu as pltpu


_TARGET_BLOCK_ELEMS = 1 << 19      # ~512K elems per tile (~2 MiB f32 / buffer)
_PALLAS_MIN_ELEMENTS = 16 * 1024   # below this, XLA fusion beats a standalone pallas_call


# ----------------------------- Pallas kernel -------------------------------

def _contrast_threshold_kernel(ct_ref, num_pos_ref, num_neg_ref, out_ref):
    # ct_ref lives in SMEM (scalar prefetch): ct_ref[0] = pos_ct, ct_ref[1] = neg_ct.
    pos_ct = ct_ref[0]
    neg_ct = ct_ref[1]
    # Cast native-dtype event counts to f32 *inside* the kernel so HBM reads
    # stay at the storage width (mem-bound kernel -> proportional BW win).
    out_ref[...] = (num_pos_ref[...].astype(jnp.float32) * pos_ct
                    - num_neg_ref[...].astype(jnp.float32) * neg_ct)


# ----------------------------- lane-dense plumbing --------------------------

def _pick_lane(total):
    """Largest lane-dense last dim (multiple of 128) that divides `total`."""
    for lane in (1024, 512, 256, 128):
        if total % lane == 0:
            return lane
    return 512   # no clean divisor -> zero-pad the tail


def _pick_block_rows(rows, lane, rows_per_block):
    """Rows per tile: user override, else sized so a tile is ~512K elements."""
    if rows_per_block is not None:
        block_rows = max(8, (int(rows_per_block) // 8) * 8)
    else:
        block_rows = max(8, ((_TARGET_BLOCK_ELEMS // lane) // 8) * 8)
    if rows <= block_rows:
        block_rows = rows            # full-dim block (exception to the /8 rule)
    return block_rows


def _to_lane_dense(x, rows, lane, total):
    flat = x.reshape(-1)
    pad = rows * lane - total
    if pad:
        flat = jnp.pad(flat, (0, pad))
    return flat.reshape(rows, lane)


def _pallas_log_intensity_diff(num_pos, num_neg, cts, rows_per_block):
    shape = num_pos.shape
    total = int(np.prod(shape))
    lane = _pick_lane(total)
    rows = -(-total // lane)

    block_rows = _pick_block_rows(rows, lane, rows_per_block)
    grid = (pl.cdiv(rows, block_rows),)

    np2d = _to_lane_dense(num_pos, rows, lane, total)
    nn2d = _to_lane_dense(num_neg, rows, lane, total)

    # Explicit VMEM budget: 2 double-buffered native-width inputs + 1
    # double-buffered f32 output, with generous headroom (still well under
    # v7x's 64 MiB physical VMEM).
    in_bytes = np.dtype(num_pos.dtype).itemsize
    tile_elems = block_rows * lane
    need = 2 * tile_elems * (2 * in_bytes + 4)   # double-buffered in+in+out
    vmem_limit = int(min(max(4 * need, 16 << 20), 48 << 20))

    blk = (block_rows, lane)
    out2d = pl.pallas_call(
        _contrast_threshold_kernel,
        out_shape=jax.ShapeDtypeStruct((rows, lane), jnp.float32),
        grid_spec=pltpu.PrefetchScalarGridSpec(
            num_scalar_prefetch=1,
            grid=grid,
            in_specs=[pl.BlockSpec(blk, lambda i, ct: (i, 0)),
                      pl.BlockSpec(blk, lambda i, ct: (i, 0))],
            out_specs=pl.BlockSpec(blk, lambda i, ct: (i, 0)),
        ),
        compiler_params=pltpu.CompilerParams(
            dimension_semantics=("parallel",),        # shard row tiles across TCs
            vmem_limit_bytes=vmem_limit,
        ),
    )(cts, np2d, nn2d)

    out_flat = out2d.reshape(-1)
    if rows * lane != total:
        out_flat = out_flat[:total]
    return out_flat.reshape(shape)


# ------------------------------ forward wrapper ------------------------------

def contrast_threshold_forward(input_event, pos_ct, neg_ct, *,
                               min_pallas_elements=_PALLAS_MIN_ELEMENTS,
                               rows_per_block=None):
    """input_event: dict with 'num_pos', 'num_neg' (any numeric dtype, any shape)
    plus arbitrary other fields that are passed through unchanged."""
    num_pos = input_event["num_pos"]
    num_neg = input_event["num_neg"]
    assert num_pos.shape == num_neg.shape
    total = int(np.prod(num_pos.shape))

    if total < min_pallas_elements:
        # Tiny tensor: pallas_call launch + per-step overhead dominates; let
        # XLA fuse the elementwise expression instead.
        log_intensity_diff = (num_pos.astype(jnp.float32) * pos_ct
                              - num_neg.astype(jnp.float32) * neg_ct)
    else:
        cts = jnp.stack([jnp.asarray(pos_ct, jnp.float32),
                         jnp.asarray(neg_ct, jnp.float32)])   # (2,) -> SMEM prefetch
        log_intensity_diff = _pallas_log_intensity_diff(
            num_pos, num_neg, cts, rows_per_block)

    # Reproduce EasyDict behavior: copy dict, drop num_pos/num_neg, add output.
    output_event = {k: v for k, v in input_event.items()
                    if k not in ("num_pos", "num_neg")}
    output_event["log_intensity_diff"] = log_intensity_diff
    return output_event


# ------------------------ parameter setup (glue) ----------------------------

def _softplus(x):
    return jnp.logaddexp(x, 0.0)


def _inv_softplus(y):
    # raw s.t. softplus(raw) == y  (y > 0)
    return y + jnp.log(-jnp.expm1(-y))


def make_contrast_threshold_params(calib_pos_ct, calib_neg_ct,
                                   parameterize_mean_ct=True):
    """Deterministically construct the module's scalar parameters and return the
    effective (pos_ct, neg_ct), mirroring the softplus parametrization."""
    # TODO(synk): real module loads calibration from the dataset directory; we
    # use deterministic in-script calibration values instead.
    calib_pos_ct = jnp.float32(calib_pos_ct)
    calib_neg_ct = jnp.float32(calib_neg_ct)
    calib_p2n = calib_pos_ct / calib_neg_ct
    calib_mean = (calib_pos_ct + calib_neg_ct) / 2.0

    raw_p2n = _inv_softplus(calib_p2n)          # learnable raw parameter
    p2n = _softplus(raw_p2n)                    # parametrized value

    if parameterize_mean_ct:
        raw_mean = _inv_softplus(calib_mean)    # learnable raw parameter
        mean_ct = _softplus(raw_mean)
        neg_ct = 2.0 * mean_ct / (p2n + 1.0)
        pos_ct = p2n * neg_ct
    else:
        neg_ct = calib_neg_ct                   # fixed buffer
        pos_ct = p2n * neg_ct
    return pos_ct, neg_ct


# --------------------------------- main -------------------------------------

if __name__ == "__main__":
    key = jax.random.PRNGKey(0)
    keys = jax.random.split(key, 8)

    pos_ct, neg_ct = make_contrast_threshold_params(
        calib_pos_ct=0.25, calib_neg_ct=0.20, parameterize_mean_ct=True)
    pos_f = float(pos_ct)
    neg_f = float(neg_ct)

    def make_event(kp, kn, shape):
        # event counts stored at their native (non-f32) dtype
        num_pos = jax.random.randint(kp, shape, 0, 8).astype(jnp.int32)
        num_neg = jax.random.randint(kn, shape, 0, 8).astype(jnp.int32)
        ts = jnp.arange(int(np.prod(shape)), dtype=jnp.float32).reshape(shape)
        return {"num_pos": num_pos, "num_neg": num_neg, "timestamp": ts}

    def check(ev, out_event):
        out = jax.block_until_ready(out_event["log_intensity_diff"])
        ref = (np.asarray(ev["num_pos"], np.float32) * pos_f
               - np.asarray(ev["num_neg"], np.float32) * neg_f)
        np.testing.assert_allclose(np.asarray(out), ref, rtol=1e-6, atol=1e-6)
        assert "num_pos" not in out_event and "num_neg" not in out_event
        assert "timestamp" in out_event

    # A) tiny tensor -> auto dispatch takes the XLA-fusion path (no Pallas).
    ev_a = make_event(keys[0], keys[1], (2, 16, 16))
    check(ev_a, contrast_threshold_forward(ev_a, pos_ct, neg_ct))

    # B) same tiny tensor with the Pallas kernel forced (single lane-dense tile).
    ev_b = make_event(keys[2], keys[3], (2, 16, 16))
    check(ev_b, contrast_threshold_forward(ev_b, pos_ct, neg_ct,
                                           min_pallas_elements=0))

    # C) multi-step grid with a ragged last row-block (rows=75, block=8).
    ev_c = make_event(keys[4], keys[5], (2, 48, 100))
    check(ev_c, contrast_threshold_forward(ev_c, pos_ct, neg_ct,
                                           min_pallas_elements=0,
                                           rows_per_block=8))

    # D) element count not a multiple of 128 -> zero-padded lane-dense fallback.
    ev_d = make_event(keys[6], keys[7], (2, 30, 30))
    check(ev_d, contrast_threshold_forward(ev_d, pos_ct, neg_ct,
                                           min_pallas_elements=0))

    # E) larger tensor on the default (adaptive) tile size -> multi-step
    #    pipelined grid at production-like settings.
    ev_e = make_event(keys[0], keys[2], (4, 256, 512))
    check(ev_e, contrast_threshold_forward(ev_e, pos_ct, neg_ct))

    print("KERNEL_OK")
</pallas_src>

<mosaic_0001>
module attributes {stable_mosaic.version = 11 : i64} {
  func.func @_contrast_threshold_kernel(%arg0: i32, %arg1: memref<2xf32, #tpu.memory_space<smem>>, %arg2: memref<1x512xi32, #tpu.memory_space<vmem>>, %arg3: memref<1x512xi32, #tpu.memory_space<vmem>>, %arg4: memref<1x512xf32, #tpu.memory_space<vmem>>) attributes {dimension_semantics = [#tpu.dimension_semantics<parallel>], iteration_bounds = array<i64: 1>, scalar_prefetch = 1 : i64, scratch_operands = 0 : i64, tpu.core_type = #tpu.core_type<tc>, window_params = [{transform_indices = @transform_0, window_bounds = array<i64: 1, 512>}, {transform_indices = @transform_1, window_bounds = array<i64: 1, 512>}, {transform_indices = @transform_2, window_bounds = array<i64: 1, 512>}]} {
    %c0 = arith.constant 0 : index
    %0 = memref.load %arg1[%c0] : memref<2xf32, #tpu.memory_space<smem>>
    %c1 = arith.constant 1 : index
    %1 = memref.load %arg1[%c1] : memref<2xf32, #tpu.memory_space<smem>>
    %c0_0 = arith.constant 0 : index
    %c0_1 = arith.constant 0 : index
    %2 = vector.load %arg2[%c0_0, %c0_1] : memref<1x512xi32, #tpu.memory_space<vmem>>, vector<1x512xi32>
    %3 = arith.sitofp %2 : vector<1x512xi32> to vector<1x512xf32>
    %4 = vector.broadcast %0 : f32 to vector<1x512xf32>
    %5 = arith.mulf %3, %4 : vector<1x512xf32>
    %c0_2 = arith.constant 0 : index
    %c0_3 = arith.constant 0 : index
    %6 = vector.load %arg3[%c0_2, %c0_3] : memref<1x512xi32, #tpu.memory_space<vmem>>, vector<1x512xi32>
    %7 = arith.sitofp %6 : vector<1x512xi32> to vector<1x512xf32>
    %8 = vector.broadcast %1 : f32 to vector<1x512xf32>
    %9 = arith.mulf %7, %8 : vector<1x512xf32>
    %10 = arith.subf %5, %9 : vector<1x512xf32>
    %c0_4 = arith.constant 0 : index
    %c0_5 = arith.constant 0 : index
    %11 = vector.load %arg4[%c0_4, %c0_5] : memref<1x512xf32, #tpu.memory_space<vmem>>, vector<1x512xf32>
    tpu.vector_store %arg4[%c0_4, %c0_5], %10 {strides = array<i32>} : memref<1x512xf32, #tpu.memory_space<vmem>>, vector<1x512xf32>,
    return
  }
  func.func @transform_0(%arg0: i32, %arg1: memref<2xf32, #tpu.memory_space<smem>>) -> (i32, i32) {
    %c0_i32 = arith.constant 0 : i32
    %c0_i32_0 = arith.constant 0 : i32
    return %arg0, %c0_i32 : i32, i32
  }
  func.func @transform_1(%arg0: i32, %arg1: memref<2xf32, #tpu.memory_space<smem>>) -> (i32, i32) {
    %c0_i32 = arith.constant 0 : i32
    %c0_i32_0 = arith.constant 0 : i32
    return %arg0, %c0_i32 : i32, i32
  }
  func.func @transform_2(%arg0: i32, %arg1: memref<2xf32, #tpu.memory_space<smem>>) -> (i32, i32) {
    %c0_i32 = arith.constant 0 : i32
    %c0_i32_0 = arith.constant 0 : i32
    return %arg0, %c0_i32 : i32, i32
  }
}

</mosaic_0001>

<bundles_post_ra>
// kernel: tpu_custom_call.1
= control target key start
LH: loop header
LB: loop body
LE: loop exit
PB: predicated region body
PF: predicated region fallthrough
CT: control target
= control target key end

     0   :  { %s180_s15 = smov [#allocation3]   ;;  %s216_s0 = inlined_call_operand.hbm [shape: f32[2], index: 0, kind: input, shape index: {}]   ;;  %s217_s1 = inlined_call_operand.hbm [shape: s32[1,512], index: 1, kind: input, shape index: {}]   ;;  %s218_s2 = inlined_call_operand.hbm [shape: s32[1,512], index: 2, kind: input, shape index: {}]   ;;  %s219_s3 = inlined_call_operand.hbm [shape: f32[1,512], index: 3, kind: output, shape index: {}]  }
   0x1   :  { %s9_s14 = sshll.u32 %s216_s0, 4  ;;  %s10_s14 = int_to_ptr.hbm [resolvable:$true] %s9_s14 }
   0x2   :  { %12 = dma.hbm_to_smem %s10_s14, 16, %s180_s15, [#allocation2] }
   0x3   :  { %172 = dma.done.wait [#allocation2], 16 }
   0x4   :  { %173 = vsyncadd [#allocation2], 4294967280 }
   0x5   :  { %15 = sfence }
   0x6   :  { %16 = vsyncpa [#allocation5], 0 }
   0x7   :  { %17 = vsyncpa [#allocation8], 0 }
   0x8   :  { %18 = vsyncpa [#allocation6], 0  ;;  %s24_s18 = sshll.u32 %s217_s1, 4  ;;  %s181_s19 = smov [#allocation4]   ;;  %s25_s18 = int_to_ptr.hbm [resolvable:$true] %s24_s18 }
   0x9   :  { %s26_s20 = sshll.u32 %s181_s19, 4  ;;  %s35_s0 = sshll.u32 %s218_s2, 4  ;;  %s27_s20 = int_to_ptr.vmem [resolvable:$true] %s26_s20  ;;  %s36_s0 = int_to_ptr.hbm [resolvable:$true] %s35_s0 }
   0xa   :  { %29 = dma.hbm_to_vmem [thread:$0]  %s25_s18, 64, %s27_s20, [#allocation5]  }
   0xb   :  { %s182_s23 = smov [#allocation7]  }
   0xc   :  { %s37_s24 = sshll.u32 %s182_s23, 4  ;;  %s38_s24 = int_to_ptr.vmem [resolvable:$true] %s37_s24 }
   0xd   :  { %40 = dma.hbm_to_vmem [thread:$0]  %s36_s0, 64, %s38_s24, [#allocation8]  }
   0xe   :  { %174 = dma.done.wait [#allocation5], 64  }
   0xf   :  { %175 = vsyncadd [#allocation5], 4294967232 }
  0x10   :  { %176 = dma.done.wait [#allocation8], 64  }
  0x11   :  { %177 = vsyncadd [#allocation8], 4294967232  ;;  %s49_s25 = sld [smem:[#allocation3]]  ;;  %v51_v0 = vld [vmem:[#allocation4] sm:$0xf]  ;;  %v60_v3 = vlaneseq  ;;  %s183_s2 = smov [#allocation9]  }
  0x12   :  { %s83_s1 = sld [smem:[#allocation3 + $0x1]]  ;;  %v55_v2 = vld [vmem:[#allocation7] sm:$0xf]  ;;  %v52_v4 = vcvt.s32.f32 %v51_v0  ;;  %s70_s26 = sshll.u32 %s183_s2, 4  ;;  %s71_s26 = int_to_ptr.vmem [resolvable:$true] %s70_s26 }
  0x13   :  { %v56_v5 = vcvt.s32.f32 %v55_v2  ;;  %s72_s29 = sshll.u32 %s219_s3, 4  ;;  %vm62_vm0 = vcmp.lt.s32.totalorder %v60_v3, 512  ;;  %s73_s29 = int_to_ptr.hbm [resolvable:$true] %s72_s29 }
  0x17   :  { %v53_v1 = vstv %s49_s25 }
  0x18   :  { %v57_v6 = vstv %s83_s1  ;;  %v54_v7 = vmul.f32 %v53_v1, %v52_v4 }
  0x19   :  { %v58_v8 = vmul.f32 %v57_v6, %v56_v5 }
  0x1b   :  { %v59_v9 = vsub.f32 %v54_v7, %v58_v8 }
  0x1d   :  { %64 = vst.msk [vmem:[#allocation9] sm:$0xf] %vm62_vm0, %v59_v9 }
  0x1e   :  { %75 = dma.vmem_to_hbm [thread:$0]  %s71_s26, 64, %s73_s29, [#allocation6]  }
  0x1f   :  { %178 = dma.done.wait [#allocation6], 64  }
  0x20   :  { %179 = vsyncadd [#allocation6], 4294967232 }
  0x21   :  { %80 = vsyncpa [#allocation5], 1 }
  0x22   :  { %81 = vsyncpa [#allocation8], 1 }
  0x23   :  { %82 = vsyncpa [#allocation6], 1 }

</bundles_post_ra>
